<compile_context>
chip_gen: v5e
topology: v5e:2x2
jax: 0.10.0
libtpu: 0.0.40
codegen_flags: <defaults>
</compile_context>

<pallas_src>
import numpy as np
import jax
import jax.numpy as jnp
from jax.experimental import pallas as pl
from jax.experimental.pallas import tpu as pltpu

# ----------------------- synthetic tree definition --------------------------
# cifar10-style tree: 10 leaf classes, 7 inner nodes, depth <= 5.
# children entries: ('leaf', class_id) with class_id = label2id[wnid] (1..10),
# or ('inner', name).
INNER = {
    'root': dict(children=[('inner', 'A'), ('inner', 'B')]),
    'A':    dict(children=[('inner', 'A1'), ('inner', 'A2')]),
    'B':    dict(children=[('inner', 'B1'), ('inner', 'B2')]),
    'A1':   dict(children=[('leaf', 1), ('leaf', 2), ('leaf', 3)]),
    'A2':   dict(children=[('leaf', 4), ('leaf', 5)]),
    'B1':   dict(children=[('leaf', 6), ('leaf', 7), ('leaf', 8)]),
    'B2':   dict(children=[('leaf', 9), ('leaf', 10)]),
}
# Node processing order (parents always before children), matching the
# layer-by-layer iteration over inner_nodes in the PyTorch code.
ORDER = ['root', 'A', 'B', 'A1', 'A2', 'B1', 'B2']
NAME2IDX = {name: i for i, name in enumerate(ORDER)}

# Tree levels (root = 1), computed parents-before-children.
LEVEL = {'root': 1}
for _name in ORDER:
    for _kind, _val in INNER[_name]['children']:
        if _kind == 'inner':
            LEVEL[_val] = LEVEL[_name] + 1
N_LEVELS = max(LEVEL.values())            # 3 for this tree

NUM_CLASSES = 10
DIM = 32

N_INNER = len(ORDER)
CMAX = max(len(INNER[n]['children']) for n in ORDER) + 1   # num_child + 1, per-node lane block
NC1 = NUM_CLASSES + 1                                      # reference out has 11 columns

NL_PAD = 128      # lane-dense width of the fused classifier / all structural matmuls
NC_PAD = 128      # lane-dense width of the class accumulator / output block
NEG_BIG = -1e30   # pad-column bias; exp(-1e30 - m) underflows to exactly 0 (never -inf)
EPS = 1e-20       # guards 0/0 on pad segments (and full-segment exp underflow)

# Packed-weight operand layout (rows; all starts 8-aligned for cheap slices).
BIAS_ROW = DIM          # 32: effective bias (node_w folded into classifier bias)
MASK_ROW = 40           # root-path mask (1.0 over the root node's lane segment)
W_ROWS = 48
N_STRUCT = N_LEVELS + 1  # [segment-sum S, transfer M_1..M_{L-1}, leaf->class scatter]

assert N_INNER * CMAX <= NL_PAD and NC1 <= NC_PAD


# ----------------------- deterministic parameter init -----------------------
def init_params(key):
    params = {}
    for name in ORDER:
        nchild = len(INNER[name]['children'])
        key, k1, k2, k3 = jax.random.split(key, 4)
        params[name] = dict(
            # node.set_weight(torch.rand(1, dim))
            node_w=jax.random.uniform(k1, (1, DIM), jnp.float32),
            # nn.Linear(dim, num_child + 1): weight (out, in), bias (out,)
            cls_w=0.1 * jax.random.normal(k2, (nchild + 1, DIM), jnp.float32),
            cls_b=0.1 * jax.random.normal(k3, (nchild + 1,), jnp.float32),
        )
    return params


def pack_params(params):
    """Pack classifiers + tree structure into two dense operands.

    w_packed (48, 128): rows 0..31 are the fused classifier weight
      (logits = x @ W + eff_bias, with node.weight folded into the bias:
       (x + nw) @ W^T + b == x @ W^T + (nw @ W^T + b)); row 32 is the effective
      bias (-1e30 on pad lanes so their softmax prob is exactly 0); row 40 is
      the root-path mask.

    tree_mats (N_STRUCT, 128, 128) 0/1 matrices:
      [0]            S  : block-diagonal ones over each node's real lanes
                          (broadcasts each node's softmax denominator back
                           across its own lanes via one matmul),
      [1..L-1]       M_l: maps a level-l node's inner-child lane to that
                          child's whole lane segment (path-prob propagation),
      [L]            SC : leaf lane -> class lane scatter.
    """
    w_all = np.zeros((DIM, NL_PAD), np.float32)
    bias = np.full((NL_PAD,), NEG_BIG, np.float32)
    root_mask = np.zeros((NL_PAD,), np.float32)
    seg_sum = np.zeros((NL_PAD, NL_PAD), np.float32)
    scatter = np.zeros((NL_PAD, NC_PAD), np.float32)
    transfer = [np.zeros((NL_PAD, NL_PAD), np.float32) for _ in range(N_LEVELS - 1)]

    for n, name in enumerate(ORDER):
        p = params[name]
        children = INNER[name]['children']
        ncols = len(children) + 1
        c0 = n * CMAX
        cw = np.asarray(p['cls_w'])            # (ncols, DIM)
        cb = np.asarray(p['cls_b'])            # (ncols,)
        nw = np.asarray(p['node_w'])[0]        # (DIM,)
        w_all[:, c0:c0 + ncols] = cw.T
        bias[c0:c0 + ncols] = cw @ nw + cb
        seg_sum[c0:c0 + ncols, c0:c0 + ncols] = 1.0
        if LEVEL[name] == 1:
            root_mask[c0:c0 + CMAX] = 1.0      # tree.path_prob = 1.0
        for i, (kind, val) in enumerate(children):
            col = c0 + i + 1                   # child i lives at lane i+1 of its parent
            if kind == 'leaf':
                scatter[col, val] = 1.0        # out[:, label2id[wnid]] += path_prob
            else:
                ci = NAME2IDX[val]
                transfer[LEVEL[name] - 1][col, ci * CMAX:(ci + 1) * CMAX] = 1.0

    w_packed = np.zeros((W_ROWS, NL_PAD), np.float32)
    w_packed[:DIM] = w_all
    w_packed[BIAS_ROW] = bias
    w_packed[MASK_ROW] = root_mask
    tree_mats = np.stack([seg_sum] + transfer + [scatter])   # (N_STRUCT, 128, 128)
    return jnp.asarray(w_packed), jnp.asarray(tree_mats)


# ------------------------------- Pallas kernel -------------------------------
def infer_tree_kernel(x_ref, w_ref, t_ref, out_ref):
    w = w_ref[0:DIM, :]                              # (32, 128), static 8-aligned slice
    bias = w_ref[BIAS_ROW:BIAS_ROW + 1, :]           # (1, 128) effective bias
    root_mask = w_ref[MASK_ROW:MASK_ROW + 1, :]      # (1, 128)

    # One fused matmul for all 7 node classifiers (node_w folded into bias).
    logits = jnp.dot(x_ref[...], w, preferred_element_type=jnp.float32) + bias

    # All per-node softmaxes at once: one 128-lane max, one exp, one
    # block-diagonal segment-sum matmul, one approx reciprocal.
    # Pad lanes carry a -1e30 bias so e == 0 there; EPS guards 0/0. (If a real
    # segment sat ~88+ below the row max its exps could all underflow; with
    # O(1) logits that cannot happen here.)
    m = jnp.max(logits, axis=1, keepdims=True)
    e = jnp.exp(logits - m)
    denom = jnp.dot(e, t_ref[0], preferred_element_type=jnp.float32)
    prob = e * pl.reciprocal(denom + EPS, approx=True)

    # Tree walk, level by level, entirely on the MXU: each transfer matmul
    # broadcasts "prob(child) * parent.path_prob" over the child's lane block.
    w_lvl = prob * root_mask                          # level-1 weighted probs
    acc = w_lvl
    for l in range(N_LEVELS - 1):                     # statically unrolled (2 transfers)
        path = jnp.dot(w_lvl, t_ref[1 + l], preferred_element_type=jnp.float32)
        w_lvl = prob * path
        acc = acc + w_lvl

    # Leaf path-probabilities -> class lanes with one 0/1 scatter matmul.
    out_ref[...] = jnp.dot(acc, t_ref[N_LEVELS], preferred_element_type=jnp.float32)


def _round_up(n, m):
    return ((n + m - 1) // m) * m


def infer_tree_forward(x, labels, packed, *, batch_tile=256):
    """forward(x, labels) -> (B, num_classes). labels are unused (as in PyTorch)."""
    del labels
    w_packed, tree_mats = packed
    b_in = x.shape[0]

    if b_in <= batch_tile:
        tb = _round_up(max(b_in, 8), 8)
        steps = 1
    else:
        tb = batch_tile
        steps = -(-b_in // tb)
    b_pad = tb * steps
    if b_pad != b_in:
        x = jnp.pad(x, ((0, b_pad - b_in), (0, 0)))

    if steps == 1:
        # Gridless call: whole arrays resident in VMEM, no pipelining overhead.
        out_full = pl.pallas_call(
            infer_tree_kernel,
            out_shape=jax.ShapeDtypeStruct((b_pad, NC_PAD), jnp.float32),
            in_specs=[pl.BlockSpec(memory_space=pltpu.MemorySpace.VMEM)] * 3,
            out_specs=pl.BlockSpec(memory_space=pltpu.MemorySpace.VMEM),
        )(x, w_packed, tree_mats)
    else:
        # Batched path: grid over batch tiles; weights/tree mats stay resident.
        out_full = pl.pallas_call(
            infer_tree_kernel,
            out_shape=jax.ShapeDtypeStruct((b_pad, NC_PAD), jnp.float32),
            grid=(steps,),
            in_specs=[
                pl.BlockSpec((tb, DIM), lambda i: (i, 0)),
                pl.BlockSpec((W_ROWS, NL_PAD), lambda i: (0, 0)),
                pl.BlockSpec((N_STRUCT, NL_PAD, NC_PAD), lambda i: (0, 0, 0)),
            ],
            out_specs=pl.BlockSpec((tb, NC_PAD), lambda i: (i, 0)),
            compiler_params=pltpu.CompilerParams(
                dimension_semantics=("parallel",)),
        )(x, w_packed, tree_mats)

    return out_full[:b_in, 1:NC1]                     # out[:, 1:]


# --------------------------- pure numpy reference ----------------------------
def reference_forward(x, params):
    x = np.asarray(x)
    out = np.zeros((x.shape[0], NC1), np.float32)
    path = {'root': np.ones((x.shape[0],), np.float32)}
    for name in ORDER:
        p = params[name]
        xt = x + np.asarray(p['node_w'])
        logits = xt @ np.asarray(p['cls_w']).T + np.asarray(p['cls_b'])
        logits = logits - logits.max(axis=1, keepdims=True)
        e = np.exp(logits)
        prob = e / e.sum(axis=1, keepdims=True)
        my_path = path[name]
        for i, (kind, val) in enumerate(INNER[name]['children']):
            child_pp = prob[:, i + 1] * my_path
            if kind == 'leaf':
                out[:, val] += child_pp
            else:
                path[val] = child_pp
    return out[:, 1:]


# TODO(synk): infer_hard() (per-sample hard tree traversal with in-place Python
# object mutation / backtracking) has no clean dense-kernel equivalent and is
# not part of forward(); it is not implemented here.

if __name__ == "__main__":
    key = jax.random.PRNGKey(0)
    params = init_params(key)
    packed = pack_params(params)

    # Tolerance: all differences are pure fp rounding — default-precision
    # (bf16-pass) MXU matmuls chained through the 0/1 structural matrices
    # (each rounds the prob-valued operand by ~2^-9 relative) plus the EUP
    # approximate reciprocal; structure/scatter matrices themselves are exact.
    RTOL, ATOL = 1e-2, 2e-3

    # --- small batch: gridless path ---
    key, kx = jax.random.split(key)
    B = 8
    x = jax.random.normal(kx, (B, DIM), jnp.float32)
    labels = jnp.zeros((B,), jnp.int32)               # forward ignores labels
    out = jax.block_until_ready(infer_tree_forward(x, labels, packed))
    ref = reference_forward(x, params)
    assert out.shape == (B, NUM_CLASSES)
    np.testing.assert_allclose(np.asarray(out), ref, rtol=RTOL, atol=ATOL)

    # --- larger batch: batch-tiled grid path ("parallel" -> both v7x cores) ---
    key, kx2 = jax.random.split(key)
    BB = 512
    xb = jax.random.normal(kx2, (BB, DIM), jnp.float32)
    outb = jax.block_until_ready(
        infer_tree_forward(xb, jnp.zeros((BB,), jnp.int32), packed, batch_tile=256))
    refb = reference_forward(xb, params)
    assert outb.shape == (BB, NUM_CLASSES)
    np.testing.assert_allclose(np.asarray(outb), refb, rtol=RTOL, atol=ATOL)

    print("KERNEL_OK")
</pallas_src>

<mosaic_0001>
module attributes {stable_mosaic.version = 11 : i64} {
  func.func @infer_tree_kernel(%arg0: memref<8x32xf32, #tpu.memory_space<vmem>>, %arg1: memref<48x128xf32, #tpu.memory_space<vmem>>, %arg2: memref<4x128x128xf32, #tpu.memory_space<vmem>>, %arg3: memref<8x128xf32, #tpu.memory_space<vmem>>) attributes {dimension_semantics = [], scalar_prefetch = 0 : i64, scratch_operands = 0 : i64, tpu.core_type = #tpu.core_type<tc>} {
    %c0 = arith.constant 0 : index
    %c0_0 = arith.constant 0 : index
    %0 = vector.load %arg1[%c0, %c0_0] : memref<48x128xf32, #tpu.memory_space<vmem>>, vector<32x128xf32>
    %c32 = arith.constant 32 : index
    %c0_1 = arith.constant 0 : index
    %1 = vector.load %arg1[%c32, %c0_1] : memref<48x128xf32, #tpu.memory_space<vmem>>, vector<1x128xf32>
    %c40 = arith.constant 40 : index
    %c0_2 = arith.constant 0 : index
    %2 = vector.load %arg1[%c40, %c0_2] : memref<48x128xf32, #tpu.memory_space<vmem>>, vector<1x128xf32>
    %c0_3 = arith.constant 0 : index
    %c0_4 = arith.constant 0 : index
    %3 = vector.load %arg0[%c0_3, %c0_4] : memref<8x32xf32, #tpu.memory_space<vmem>>, vector<8x32xf32>
    %cst = arith.constant dense<0.000000e+00> : vector<8x128xf32>
    %4 = tpu.matmul %3, %0, %cst {dimension_numbers = #tpu.dot_dimension_numbers<[1], [0], [0], [1], [0, 0, 1, 1], [], []>} : vector<8x32xf32>, vector<32x128xf32>, vector<8x128xf32> -> vector<8x128xf32>
    %5 = vector.broadcast %1 : vector<1x128xf32> to vector<8x128xf32>
    %6 = arith.addf %4, %5 : vector<8x128xf32>
    %cst_5 = arith.constant dense<0xFF800000> : vector<8xf32>
    %7 = vector.multi_reduction <maximumf>, %6, %cst_5 [1] : vector<8x128xf32> to vector<8xf32>
    %8 = vector.shape_cast %7 : vector<8xf32> to vector<8x1xf32>
    %9 = vector.broadcast %8 : vector<8x1xf32> to vector<8x128xf32>
    %10 = arith.subf %6, %9 : vector<8x128xf32>
    %11 = math.exp %10 : vector<8x128xf32>
    %c0_6 = arith.constant 0 : index
    %c0_7 = arith.constant 0 : index
    %c0_8 = arith.constant 0 : index
    %12 = vector.load %arg2[%c0_6, %c0_7, %c0_8] : memref<4x128x128xf32, #tpu.memory_space<vmem>>, vector<1x128x128xf32>
    %13 = vector.shape_cast %12 : vector<1x128x128xf32> to vector<128x128xf32>
    %cst_9 = arith.constant dense<0.000000e+00> : vector<8x128xf32>
    %14 = tpu.matmul %11, %13, %cst_9 {dimension_numbers = #tpu.dot_dimension_numbers<[1], [0], [0], [1], [0, 0, 1, 1], [], []>} : vector<8x128xf32>, vector<128x128xf32>, vector<8x128xf32> -> vector<8x128xf32>
    %cst_10 = arith.constant 9.99999968E-21 : f32
    %15 = vector.broadcast %cst_10 : f32 to vector<8x128xf32>
    %16 = arith.addf %14, %15 : vector<8x128xf32>
    %17 = tpu.reciprocal %16 {approx = true} : vector<8x128xf32> -> vector<8x128xf32>
    %18 = arith.mulf %11, %17 : vector<8x128xf32>
    %19 = vector.broadcast %2 : vector<1x128xf32> to vector<8x128xf32>
    %20 = arith.mulf %18, %19 : vector<8x128xf32>
    %c1 = arith.constant 1 : index
    %c0_11 = arith.constant 0 : index
    %c0_12 = arith.constant 0 : index
    %21 = vector.load %arg2[%c1, %c0_11, %c0_12] : memref<4x128x128xf32, #tpu.memory_space<vmem>>, vector<1x128x128xf32>
    %22 = vector.shape_cast %21 : vector<1x128x128xf32> to vector<128x128xf32>
    %cst_13 = arith.constant dense<0.000000e+00> : vector<8x128xf32>
    %23 = tpu.matmul %20, %22, %cst_13 {dimension_numbers = #tpu.dot_dimension_numbers<[1], [0], [0], [1], [0, 0, 1, 1], [], []>} : vector<8x128xf32>, vector<128x128xf32>, vector<8x128xf32> -> vector<8x128xf32>
    %24 = arith.mulf %18, %23 : vector<8x128xf32>
    %25 = arith.addf %20, %24 : vector<8x128xf32>
    %c2 = arith.constant 2 : index
    %c0_14 = arith.constant 0 : index
    %c0_15 = arith.constant 0 : index
    %26 = vector.load %arg2[%c2, %c0_14, %c0_15] : memref<4x128x128xf32, #tpu.memory_space<vmem>>, vector<1x128x128xf32>
    %27 = vector.shape_cast %26 : vector<1x128x128xf32> to vector<128x128xf32>
    %cst_16 = arith.constant dense<0.000000e+00> : vector<8x128xf32>
    %28 = tpu.matmul %24, %27, %cst_16 {dimension_numbers = #tpu.dot_dimension_numbers<[1], [0], [0], [1], [0, 0, 1, 1], [], []>} : vector<8x128xf32>, vector<128x128xf32>, vector<8x128xf32> -> vector<8x128xf32>
    %29 = arith.mulf %18, %28 : vector<8x128xf32>
    %30 = arith.addf %25, %29 : vector<8x128xf32>
    %c3 = arith.constant 3 : index
    %c0_17 = arith.constant 0 : index
    %c0_18 = arith.constant 0 : index
    %31 = vector.load %arg2[%c3, %c0_17, %c0_18] : memref<4x128x128xf32, #tpu.memory_space<vmem>>, vector<1x128x128xf32>
    %32 = vector.shape_cast %31 : vector<1x128x128xf32> to vector<128x128xf32>
    %cst_19 = arith.constant dense<0.000000e+00> : vector<8x128xf32>
    %33 = tpu.matmul %30, %32, %cst_19 {dimension_numbers = #tpu.dot_dimension_numbers<[1], [0], [0], [1], [0, 0, 1, 1], [], []>} : vector<8x128xf32>, vector<128x128xf32>, vector<8x128xf32> -> vector<8x128xf32>
    %c0_20 = arith.constant 0 : index
    %c0_21 = arith.constant 0 : index
    %34 = vector.load %arg3[%c0_20, %c0_21] : memref<8x128xf32, #tpu.memory_space<vmem>>, vector<8x128xf32>
    tpu.vector_store %arg3[%c0_20, %c0_21], %33 {strides = array<i32>} : memref<8x128xf32, #tpu.memory_space<vmem>>, vector<8x128xf32>,
    return
  }
}

</mosaic_0001>

<bundles_post_ra>
// kernel: tpu_custom_call.1
= control target key start
LH: loop header
LB: loop body
LE: loop exit
PB: predicated region body
PF: predicated region fallthrough
CT: control target
= control target key end

     0   :  { %8 = vsyncpa [#allocation3], 0  ;;  %s424_s0 = inlined_call_operand.hbm [shape: f32[8,32], index: 0, kind: input, shape index: {}]   ;;  %s425_s1 = inlined_call_operand.hbm [shape: f32[48,128], index: 1, kind: input, shape index: {}]   ;;  %s426_s2 = inlined_call_operand.hbm [shape: f32[4,128,128], index: 2, kind: input, shape index: {}]   ;;  %s427_s3 = inlined_call_operand.hbm [shape: f32[8,128], index: 3, kind: output, shape index: {}]  }
   0x1   :  { %9 = vsyncpa [#allocation6], 0  ;;  %s26_s14 = sshll.u32 %s425_s1, 4  ;;  %s27_s14 = int_to_ptr.hbm [resolvable:$true] %s26_s14 }
   0x2   :  { %10 = vsyncpa [#allocation4], 0  ;;  %s386_s15 = smov [#allocation5]   ;;  %s16_s19 = sshll.u32 %s424_s0, 4  ;;  %s17_s19 = int_to_ptr.hbm [resolvable:$true] %s16_s19 }
   0x3   :  { %s28_s16 = sshll.u32 %s386_s15, 4  ;;  %s387_s20 = smov 128   ;;  %s29_s16 = int_to_ptr.vmem [resolvable:$true] %s28_s16 }
   0x4   :  { %s388_s21 = smov 8   ;;  %s389_s22 = smov [#allocation2]  }
   0x5   :  { %34 = dma.hbm_to_vmem [thread:$0]  %s27_s14, 768, %s29_s16, [#allocation6], %s387_s20, %s387_s20, %s388_s21  }
   0x6   :  { %s18_s23 = sshll.u32 %s389_s22, 4  ;;  %s39_s26 = sshll.u32 %s426_s2, 4  ;;  %s19_s23 = int_to_ptr.vmem [resolvable:$true] %s18_s23  ;;  %s40_s26 = int_to_ptr.hbm [resolvable:$true] %s39_s26 }
   0x7   :  { %21 = dma.hbm_to_vmem [thread:$0]  %s17_s19, 128, %s19_s23, [#allocation3]  }
   0x8   :  { %s390_s1 = smov [#allocation7]  }
   0x9   :  { %s41_s27 = sshll.u32 %s390_s1, 4  ;;  %s42_s27 = int_to_ptr.vmem [resolvable:$true] %s41_s27 }
   0xa   :  { %47 = dma.hbm_to_vmem [thread:$0]  %s40_s26, 8192, %s42_s27, [#allocation6], %s387_s20, %s387_s20, %s388_s21  }
   0xb   :  { %380 = dma.done.wait [#allocation3], 128  }
   0xc   :  { %381 = vsyncadd [#allocation3], 4294967168 }
   0xd   :  { %382 = dma.done.wait [#allocation6], 8960  }
   0xe   :  { %383 = vsyncadd [#allocation6], 4294958336  ;;  %v63_v0 = vld [vmem:[#allocation5 + $0x18] sm:$0xff]  ;;  %v62_v1 = vld [vmem:[#allocation5 + $0x10] sm:$0xff]  ;;  %vm68_vm0 = vcmask 261120   ;;  %s391_s0 = smov [#allocation8]  }
   0xf   :  { %84 = vmatpush.msra.mxu0 %v63_v0  ;;  %v61_v2 = vld [vmem:[#allocation5 + $0x8] sm:$0xff]  ;;  %v60_v3 = vld [vmem:[#allocation5] sm:$0xff]  ;;  %v66_v4 = vld [vmem:[#allocation2] sm:$0xff]  ;;  %s258_s2 = sshll.u32 %s391_s0, 4  ;;  %s260_s30 = sshll.u32 %s427_s3, 4  ;;  %s259_s2 = int_to_ptr.vmem [resolvable:$true] %s258_s2  ;;  %s261_s30 = int_to_ptr.hbm [resolvable:$true] %s260_s30 }
  0x10   :  { %v112_v5 = vld [vmem:[#allocation7 + $0x78] sm:$0xff]  ;;  %v111_v6 = vld [vmem:[#allocation7 + $0x70] sm:$0xff]  ;;  %v110_v7 = vld [vmem:[#allocation7 + $0x68] sm:$0xff] }
  0x11   :  { %85 = vmatpush.msra.mxu0 %v62_v1  ;;  %113 = vmatpush.msra.mxu1 %v112_v5  ;;  %v109_v8 = vld [vmem:[#allocation7 + $0x60] sm:$0xff]  ;;  %v108_v9 = vld [vmem:[#allocation7 + $0x58] sm:$0xff]  ;;  %v107_v10 = vld [vmem:[#allocation7 + $0x50] sm:$0xff] }
  0x12   :  { %v106_v11 = vld [vmem:[#allocation7 + $0x48] sm:$0xff]  ;;  %v105_v12 = vld [vmem:[#allocation7 + $0x40] sm:$0xff]  ;;  %v104_v13 = vld [vmem:[#allocation7 + $0x38] sm:$0xff] }
  0x13   :  { %86 = vmatpush.msra.mxu0 %v61_v2  ;;  %114 = vmatpush.msra.mxu1 %v111_v6  ;;  %v103_v14 = vld [vmem:[#allocation7 + $0x30] sm:$0xff]  ;;  %v102_v18 = vld [vmem:[#allocation7 + $0x28] sm:$0xff]  ;;  %v101_v19 = vld [vmem:[#allocation7 + $0x20] sm:$0xff] }
  0x14   :  { %v278_v15 = vld [vmem:[#allocation5 + $0x20] ss:$0 sm:$0xff]  ;;  %v100_v20 = vld [vmem:[#allocation7 + $0x18] sm:$0xff]  ;;  %v98_v22 = vld [vmem:[#allocation7 + $0x8] sm:$0xff] }
  0x15   :  { %87 = vmatpush.msra.mxu0 %v60_v3  ;;  %115 = vmatpush.msra.mxu1 %v110_v7  ;;  %v99_v21 = vld [vmem:[#allocation7 + $0x10] sm:$0xff]  ;;  %v97_v23 = vld [vmem:[#allocation7] sm:$0xff]  ;;  %v153_v24 = vld [vmem:[#allocation7 + $0xf8] sm:$0xff] }
  0x16   :  { %271 = vmatmul.msk.f32.vlgmr.msra.gmra.mxu0 %vm68_vm0, %v66_v4  ;;  %v152_v25 = vld [vmem:[#allocation7 + $0xf0] sm:$0xff]  ;;  %154 = vmatpush.msra.mxu2 %v153_v24  ;;  %v151_v26 = vld [vmem:[#allocation7 + $0xe8] sm:$0xff]  ;;  %v150_v27 = vld [vmem:[#allocation7 + $0xe0] sm:$0xff] }
  0x17   :  { %116 = vmatpush.msra.mxu1 %v109_v8  ;;  %v149_v28 = vld [vmem:[#allocation7 + $0xd8] sm:$0xff]  ;;  %v148_v29 = vld [vmem:[#allocation7 + $0xd0] sm:$0xff]  ;;  %v147_v30 = vld [vmem:[#allocation7 + $0xc8] sm:$0xff] }
  0x18   :  { %155 = vmatpush.msra.mxu2 %v152_v25  ;;  %v146_v31 = vld [vmem:[#allocation7 + $0xc0] sm:$0xff]  ;;  %v145_v32 = vld [vmem:[#allocation7 + $0xb8] sm:$0xff]  ;;  %v144_v37 = vld [vmem:[#allocation7 + $0xb0] sm:$0xff] }
  0x19   :  { %117 = vmatpush.msra.mxu1 %v108_v9  ;;  %v143_v38 = vld [vmem:[#allocation7 + $0xa8] sm:$0xff]  ;;  %v142_v39 = vld [vmem:[#allocation7 + $0xa0] sm:$0xff]  ;;  %v141_v40 = vld [vmem:[#allocation7 + $0x98] sm:$0xff] }
  0x1a   :  { %156 = vmatpush.msra.mxu2 %v151_v26  ;;  %v140_v41 = vld [vmem:[#allocation7 + $0x90] sm:$0xff]  ;;  %v139_v42 = vld [vmem:[#allocation7 + $0x88] sm:$0xff]  ;;  %v138_v43 = vld [vmem:[#allocation7 + $0x80] sm:$0xff] }
  0x1b   :  { %118 = vmatpush.msra.mxu1 %v107_v10  ;;  %v192_v44 = vld [vmem:[#allocation7 + $0x178] sm:$0xff]  ;;  %v191_v45 = vld [vmem:[#allocation7 + $0x170] sm:$0xff]  ;;  %v190_v46 = vld [vmem:[#allocation7 + $0x168] sm:$0xff] }
  0x1c   :  { %157 = vmatpush.msra.mxu2 %v150_v27  ;;  %193 = vmatpush.msra.mxu3 %v192_v44  ;;  %v189_v47 = vld [vmem:[#allocation7 + $0x160] sm:$0xff]  ;;  %v188_v48 = vld [vmem:[#allocation7 + $0x158] sm:$0xff]  ;;  %v187_v49 = vld [vmem:[#allocation7 + $0x150] sm:$0xff] }
  0x1d   :  { %119 = vmatpush.msra.mxu1 %v106_v11  ;;  %v186_v50 = vld [vmem:[#allocation7 + $0x148] sm:$0xff]  ;;  %v185_v51 = vld [vmem:[#allocation7 + $0x140] sm:$0xff]  ;;  %v184_v52 = vld [vmem:[#allocation7 + $0x138] sm:$0xff] }
  0x1e   :  { %158 = vmatpush.msra.mxu2 %v149_v28  ;;  %194 = vmatpush.msra.mxu3 %v191_v45  ;;  %v183_v53 = vld [vmem:[#allocation7 + $0x130] sm:$0xff]  ;;  %v182_v55 = vld [vmem:[#allocation7 + $0x128] sm:$0xff]  ;;  %v181_v57 = vld [vmem:[#allocation7 + $0x120] sm:$0xff] }
  0x1f   :  { %120 = vmatpush.msra.mxu1 %v105_v12  ;;  %v180_v58 = vld [vmem:[#allocation7 + $0x118] sm:$0xff]  ;;  %v179_v59 = vld [vmem:[#allocation7 + $0x110] sm:$0xff]  ;;  %v178_v0 = vld [vmem:[#allocation7 + $0x108] sm:$0xff] }
  0x20   :  { %159 = vmatpush.msra.mxu2 %v148_v29  ;;  %195 = vmatpush.msra.mxu3 %v190_v46  ;;  %v279_v60 = vld [vmem:[#allocation5 + $0x28] ss:$0 sm:$0xff]  ;;  %v177_v1 = vld [vmem:[#allocation7 + $0x100] sm:$0xff]  ;;  %v230_v3 = vld [vmem:[#allocation7 + $0x1f0] sm:$0xff] }
  0x21   :  { %121 = vmatpush.msra.mxu1 %v104_v13  ;;  %v231_v2 = vld [vmem:[#allocation7 + $0x1f8] sm:$0xff]  ;;  %v229_v4 = vld [vmem:[#allocation7 + $0x1e8] sm:$0xff]  ;;  %v228_v5 = vld [vmem:[#allocation7 + $0x1e0] sm:$0xff] }
  0x22   :  { %160 = vmatpush.msra.mxu2 %v147_v30  ;;  %196 = vmatpush.msra.mxu3 %v189_v47  ;;  %v227_v6 = vld [vmem:[#allocation7 + $0x1d8] sm:$0xff]  ;;  %v226_v7 = vld [vmem:[#allocation7 + $0x1d0] sm:$0xff]  ;;  %v225_v8 = vld [vmem:[#allocation7 + $0x1c8] sm:$0xff] }
  0x23   :  { %122 = vmatpush.msra.mxu1 %v103_v14  ;;  %232 = vmatpush.msrb.mxu0 %v231_v2  ;;  %v224_v9 = vld [vmem:[#allocation7 + $0x1c0] sm:$0xff]  ;;  %v223_v10 = vld [vmem:[#allocation7 + $0x1b8] sm:$0xff]  ;;  %v222_v11 = vld [vmem:[#allocation7 + $0x1b0] sm:$0xff] }
  0x24   :  { %161 = vmatpush.msra.mxu2 %v146_v31  ;;  %197 = vmatpush.msra.mxu3 %v188_v48  ;;  %v221_v12 = vld [vmem:[#allocation7 + $0x1a8] sm:$0xff]  ;;  %v220_v13 = vld [vmem:[#allocation7 + $0x1a0] sm:$0xff]  ;;  %v219_v14 = vld [vmem:[#allocation7 + $0x198] sm:$0xff] }
  0x25   :  { %123 = vmatpush.msra.mxu1 %v102_v18  ;;  %233 = vmatpush.msrb.mxu0 %v230_v3  ;;  %v217_v18 = vld [vmem:[#allocation7 + $0x188] sm:$0xff] }
  0x26   :  { %162 = vmatpush.msra.mxu2 %v145_v32  ;;  %198 = vmatpush.msra.mxu3 %v187_v49 }
  0x27   :  { %124 = vmatpush.msra.mxu1 %v101_v19  ;;  %234 = vmatpush.msrb.mxu0 %v229_v4  ;;  %v216_v19 = vld [vmem:[#allocation7 + $0x180] sm:$0xff] }
  0x28   :  { %163 = vmatpush.msra.mxu2 %v144_v37  ;;  %199 = vmatpush.msra.mxu3 %v186_v50 }
  0x29   :  { %125 = vmatpush.msra.mxu1 %v100_v20  ;;  %235 = vmatpush.msrb.mxu0 %v228_v5 }
  0x2a   :  { %164 = vmatpush.msra.mxu2 %v143_v38  ;;  %200 = vmatpush.msra.mxu3 %v185_v51 }
  0x2b   :  { %126 = vmatpush.msra.mxu1 %v99_v21  ;;  %236 = vmatpush.msrb.mxu0 %v227_v6 }
  0x2c   :  { %165 = vmatpush.msra.mxu2 %v142_v39  ;;  %201 = vmatpush.msra.mxu3 %v184_v52 }
  0x2d   :  { %127 = vmatpush.msra.mxu1 %v98_v22  ;;  %237 = vmatpush.msrb.mxu0 %v226_v7 }
  0x2e   :  { %166 = vmatpush.msra.mxu2 %v141_v40  ;;  %202 = vmatpush.msra.mxu3 %v183_v53 }
  0x2f   :  { %128 = vmatpush.msra.mxu1 %v97_v23  ;;  %238 = vmatpush.msrb.mxu0 %v225_v8 }
  0x30   :  { %167 = vmatpush.msra.mxu2 %v140_v41  ;;  %203 = vmatpush.msra.mxu3 %v182_v55 }
  0x31   :  { %239 = vmatpush.msrb.mxu0 %v224_v9 }
  0x32   :  { %168 = vmatpush.msra.mxu2 %v139_v42  ;;  %204 = vmatpush.msra.mxu3 %v181_v57 }
  0x33   :  { %240 = vmatpush.msrb.mxu0 %v223_v10 }
  0x34   :  { %169 = vmatpush.msra.mxu2 %v138_v43  ;;  %205 = vmatpush.msra.mxu3 %v180_v58 }
  0x35   :  { %241 = vmatpush.msrb.mxu0 %v222_v11 }
  0x36   :  { %206 = vmatpush.msra.mxu3 %v179_v59 }
  0x37   :  { %242 = vmatpush.msrb.mxu0 %v221_v12 }
  0x38   :  { %207 = vmatpush.msra.mxu3 %v178_v0 }
  0x39   :  { %243 = vmatpush.msrb.mxu0 %v220_v13 }
  0x3a   :  { %208 = vmatpush.msra.mxu3 %v177_v1 }
  0x3b   :  { %244 = vmatpush.msrb.mxu0 %v219_v14 }
  0x93   :  { %v89_v16 = vpop.f32.mrf.mxu0 }
  0x94   :  { %v90_v17 = vadd.f32 %v278_v15, %v89_v16 }
  0x96   :  { %92 = vmax.xlane.f32.xlu0 %v90_v17 }
 0x109   :  { %v93_v33 = vpop.xlane.xlu0 %92 }
 0x10a   :  { %v94_v34 = vsub.f32 %v90_v17, %v93_v33  ;;  %v218_v17 = vld [vmem:[#allocation7 + $0x190] sm:$0xff] }
 0x10b   :  { %245 = vmatpush.msrb.mxu0 %v218_v17 }
 0x10c   :  { %v95_v35 = vmul.f32 1.442695, %v94_v34 }
 0x10d   :  { %246 = vmatpush.msrb.mxu0 %v217_v18 }
 0x10e   :  { %280 = vpow2.f32 %v95_v35 }
 0x10f   :  { %247 = vmatpush.msrb.mxu0 %v216_v19 }
 0x114   :  { %v281_v36 = vpop.eup %280 }
 0x115   :  { %129 = vmatmul.f32.vlgmr.msra.gmra.mxu1 %v281_v36 }
 0x192   :  { %v130_v54 = vpop.f32.mrf.mxu1 }
 0x193   :  { %v131_v56 = vadd.f32 1e-20, %v130_v54 }
 0x195   :  { %282 = vrcp.f32 %v131_v56 }
 0x19b   :  { %v283_v61 = vpop.eup %282 }
 0x19c   :  { %v134_v62 = vmul.f32 %v283_v61, %v281_v36 }
 0x19e   :  { %v136_v63 = vmul.f32 %v279_v60, %v134_v62 }
 0x1a0   :  { %170 = vmatmul.f32.vlgmr.msra.gmra.mxu2 %v136_v63 }
 0x223   :  { %v171_v15 = vpop.f32.mrf.mxu2 }
 0x224   :  { %v174_v16 = vmul.f32 %v171_v15, %v134_v62 }
 0x226   :  { %209 = vmatmul.f32.vlgmr.msra.gmra.mxu3 %v174_v16  ;;  %v175_v21 = vadd.f32 %v174_v16, %v136_v63 }
 0x2a9   :  { %v210_v20 = vpop.f32.mrf.mxu3 }
 0x2aa   :  { %v213_v22 = vmul.f32 %v210_v20, %v134_v62 }
 0x2ac   :  { %v214_v23 = vadd.f32 %v213_v22, %v175_v21 }
 0x2ae   :  { %248 = vmatmul.f32.vlgmr.msrb.gmra.mxu0 %v214_v23 }
 0x32b   :  { %v249_v24 = vpop.f32.mrf.mxu0 }
 0x32c   :  { %252 = vst [vmem:[#allocation8] sm:$0xff] %v249_v24 }
 0x32d   :  { %263 = dma.vmem_to_hbm [thread:$0]  %s259_s2, 128, %s261_s30, [#allocation4]  }
 0x32e   :  { %384 = dma.done.wait [#allocation4], 128  }
 0x32f   :  { %385 = vsyncadd [#allocation4], 4294967168 }
 0x330   :  { %268 = vsyncpa [#allocation3], 1 }
 0x331   :  { %269 = vsyncpa [#allocation6], 1 }
 0x332   :  { %270 = vsyncpa [#allocation4], 1 }

</bundles_post_ra>
